<compile_context>
chip_gen: v7x
topology: tpu7x:2x2x1
jax: 0.10.0
libtpu: 0.0.40
codegen_flags: <defaults>
</compile_context>

<pallas_src>
import jax
import jax.numpy as jnp
from jax.experimental import pallas as pl
from jax.experimental.pallas import tpu as pltpu

_NEG_BIG = -1e30  # effectively -inf for the padded logit columns


def _round_up(n, m):
    return ((n + m - 1) // m) * m


def mlp_kernel(x_ref, w1_ref, b1_ref, w2_ref, b2_ref, w3_ref, b3_ref, o_ref):
    # x_ref: (TB, 784) f32; weights bf16; biases f32; o_ref: (TB, 128) bf16.
    x = x_ref[...].astype(jnp.bfloat16)           # cheap VPU cast, no HBM copy

    h1 = jnp.dot(x, w1_ref[...], preferred_element_type=jnp.float32) + b1_ref[...]
    h1 = jnp.maximum(h1, 0.0)

    h2 = jnp.dot(h1.astype(jnp.bfloat16), w2_ref[...],
                 preferred_element_type=jnp.float32) + b2_ref[...]
    h2 = jnp.maximum(h2, 0.0)

    # Padded w3 columns are zero and b3 carries -1e30 in padded columns, so the
    # 118 fake logits are already "masked" -- no iota/where needed.
    logits = jnp.dot(h2.astype(jnp.bfloat16), w3_ref[...],
                     preferred_element_type=jnp.float32) + b3_ref[...]

    # Numerically stable log_softmax over the last axis (f32).
    m = jnp.max(logits, axis=-1, keepdims=True)
    shifted = logits - m
    lse = jnp.log(jnp.sum(jnp.exp(shifted), axis=-1, keepdims=True))
    o_ref[...] = (shifted - lse).astype(o_ref.dtype)


def mlp_forward(x, params):
    """x: (B, 1, 28, 28) or (B, 784) -> (B, 10) float32 log-probs."""
    w1, b1, w2, b2, w3, b3 = params
    B = x.shape[0]

    # Flatten exactly like torch's x.view(B, -1). Pure reshape: no HBM copy.
    x_flat = x.reshape(B, -1)
    K = x_flat.shape[1]            # 784 (left un-padded; full-dim block is legal)
    H1 = w1.shape[1]               # 128
    H2 = w2.shape[1]               # 64
    H2P = 128                      # fc2 out padded to 128 (lane-dense)
    NOUT = w3.shape[1]             # 10
    NP = 128                       # fc3 out padded to 128 (unmasked stores)

    # --- Weight/bias prep (tiny, one-time). Zero K/H padding is benign:
    # --- relu(0)=0 and padded w3 rows are zero. ---
    w1_p = w1.astype(jnp.bfloat16)                                  # (784, 128)
    b1_p = b1.reshape(1, H1).astype(jnp.float32)
    w2_p = jnp.zeros((H1, H2P), jnp.bfloat16).at[:, :H2].set(w2.astype(jnp.bfloat16))
    b2_p = jnp.zeros((1, H2P), jnp.float32).at[:, :H2].set(
        b2.reshape(1, -1).astype(jnp.float32))
    w3_p = jnp.zeros((H2P, NP), jnp.bfloat16).at[:H2, :NOUT].set(w3.astype(jnp.bfloat16))
    # Bake the padded-logit mask into the bias: columns 10..127 -> -1e30.
    b3_p = jnp.full((1, NP), _NEG_BIG, jnp.float32).at[:, :NOUT].set(
        b3.reshape(1, -1).astype(jnp.float32))

    # --- Batch tile selection: no batch padding; partial last tile is masked.
    # Small B: one full-dim tile. Large B: >=2 grid steps (v7x megacore),
    # 16-aligned tiles, capped at 2048 so f32 x tiles + f32 intermediates fit
    # v7x's 64 MiB VMEM under the 48 MiB limit below.
    TB_MAX = 2048
    if B <= 512:
        TB = B
    else:
        TB = min(TB_MAX, _round_up(pl.cdiv(B, 2), 16))
    grid = (pl.cdiv(B, TB),)

    out_padded = pl.pallas_call(
        mlp_kernel,
        out_shape=jax.ShapeDtypeStruct((B, NP), jnp.bfloat16),
        grid=grid,
        in_specs=[
            pl.BlockSpec((TB, K), lambda i: (i, 0)),     # x: tiled over batch
            pl.BlockSpec((K, H1), lambda i: (0, 0)),     # w1: VMEM-resident
            pl.BlockSpec((1, H1), lambda i: (0, 0)),     # b1
            pl.BlockSpec((H1, H2P), lambda i: (0, 0)),   # w2
            pl.BlockSpec((1, H2P), lambda i: (0, 0)),    # b2
            pl.BlockSpec((H2P, NP), lambda i: (0, 0)),   # w3
            pl.BlockSpec((1, NP), lambda i: (0, 0)),     # b3 (with baked mask)
        ],
        out_specs=pl.BlockSpec((TB, NP), lambda i: (i, 0)),
        compiler_params=pltpu.CompilerParams(
            dimension_semantics=("parallel",),
            vmem_limit_bytes=48 * 1024 * 1024,
        ),
    )(x_flat, w1_p, b1_p, w2_p, b2_p, w3_p, b3_p)

    # Drop the padded logit columns; upcast for downstream f32 consumers.
    return out_padded[:, :NOUT].astype(jnp.float32)


def init_params(key):
    """Deterministic param init matching the PyTorch module's shapes."""
    dims = [(784, 128), (128, 64), (64, 10)]
    params = []
    for fan_in, fan_out in dims:
        kw, kb, key = jax.random.split(key, 3)
        bound = 1.0 / jnp.sqrt(fan_in)
        w = jax.random.uniform(kw, (fan_in, fan_out), jnp.float32, -bound, bound)
        b = jax.random.uniform(kb, (1, fan_out), jnp.float32, -bound, bound)
        params += [w, b]
    return tuple(params)


def reference_forward(x, params):
    """Pure-JAX f32 reference of the PyTorch forward (for correctness check)."""
    w1, b1, w2, b2, w3, b3 = params
    xf = x.reshape(x.shape[0], -1)
    h1 = jnp.maximum(xf @ w1 + b1, 0.0)
    h2 = jnp.maximum(h1 @ w2 + b2, 0.0)
    return jax.nn.log_softmax(h2 @ w3 + b3, axis=1)


if __name__ == "__main__":
    key = jax.random.PRNGKey(0)
    kx, kp = jax.random.split(key)

    # Small MNIST-like batch: (B=2, C=1, H=28, W=28) -> flattens to 784 features.
    x = jax.random.normal(kx, (2, 1, 28, 28), dtype=jnp.float32)
    params = init_params(kp)

    out = mlp_forward(x, params)
    out = jax.block_until_ready(out)

    # Sanity: shape, finiteness, rows sum (in prob space) to 1, and agreement
    # with the f32 reference (loose tolerance: bf16 inputs/weights/output).
    assert out.shape == (2, 10)
    assert bool(jnp.all(jnp.isfinite(out)))
    row_sums = jnp.sum(jnp.exp(out), axis=1)
    assert jnp.allclose(row_sums, 1.0, atol=3e-2)
    ref = reference_forward(x, params)
    assert bool(jnp.max(jnp.abs(out - ref)) < 0.1)

    print("KERNEL_OK")
</pallas_src>

<mosaic_0001>
module attributes {stable_mosaic.version = 11 : i64} {
  func.func @mlp_kernel(%arg0: i32, %arg1: memref<2x784xf32, #tpu.memory_space<vmem>>, %arg2: memref<784x128xbf16, #tpu.memory_space<vmem>>, %arg3: memref<1x128xf32, #tpu.memory_space<vmem>>, %arg4: memref<128x128xbf16, #tpu.memory_space<vmem>>, %arg5: memref<1x128xf32, #tpu.memory_space<vmem>>, %arg6: memref<128x128xbf16, #tpu.memory_space<vmem>>, %arg7: memref<1x128xf32, #tpu.memory_space<vmem>>, %arg8: memref<2x128xbf16, #tpu.memory_space<vmem>>) attributes {dimension_semantics = [#tpu.dimension_semantics<parallel>], iteration_bounds = array<i64: 1>, scalar_prefetch = 0 : i64, scratch_operands = 0 : i64, tpu.core_type = #tpu.core_type<tc>, window_params = [{transform_indices = @transform_0, window_bounds = array<i64: 2, 784>}, {pipeline_mode = #tpu.pipeline_mode<synchronous>, transform_indices = @transform_1, window_bounds = array<i64: 784, 128>}, {pipeline_mode = #tpu.pipeline_mode<synchronous>, transform_indices = @transform_2, window_bounds = array<i64: 1, 128>}, {pipeline_mode = #tpu.pipeline_mode<synchronous>, transform_indices = @transform_3, window_bounds = array<i64: 128, 128>}, {pipeline_mode = #tpu.pipeline_mode<synchronous>, transform_indices = @transform_4, window_bounds = array<i64: 1, 128>}, {pipeline_mode = #tpu.pipeline_mode<synchronous>, transform_indices = @transform_5, window_bounds = array<i64: 128, 128>}, {pipeline_mode = #tpu.pipeline_mode<synchronous>, transform_indices = @transform_6, window_bounds = array<i64: 1, 128>}, {transform_indices = @transform_7, window_bounds = array<i64: 2, 128>}]} {
    %c0 = arith.constant 0 : index
    %c0_0 = arith.constant 0 : index
    %0 = vector.load %arg1[%c0, %c0_0] : memref<2x784xf32, #tpu.memory_space<vmem>>, vector<2x784xf32>
    %1 = arith.truncf %0 : vector<2x784xf32> to vector<2x784xbf16>
    %c0_1 = arith.constant 0 : index
    %c0_2 = arith.constant 0 : index
    %2 = vector.load %arg2[%c0_1, %c0_2] : memref<784x128xbf16, #tpu.memory_space<vmem>>, vector<784x128xbf16>
    %cst = arith.constant dense<0.000000e+00> : vector<2x128xf32>
    %3 = tpu.matmul %1, %2, %cst {dimension_numbers = #tpu.dot_dimension_numbers<[1], [0], [0], [1], [0, 0, 1, 1], [], []>} : vector<2x784xbf16>, vector<784x128xbf16>, vector<2x128xf32> -> vector<2x128xf32>
    %c0_3 = arith.constant 0 : index
    %c0_4 = arith.constant 0 : index
    %4 = vector.load %arg3[%c0_3, %c0_4] : memref<1x128xf32, #tpu.memory_space<vmem>>, vector<1x128xf32>
    %5 = vector.broadcast %4 : vector<1x128xf32> to vector<2x128xf32>
    %6 = arith.addf %3, %5 : vector<2x128xf32>
    %cst_5 = arith.constant 0.000000e+00 : f32
    %7 = vector.broadcast %cst_5 : f32 to vector<2x128xf32>
    %8 = arith.maximumf %6, %7 : vector<2x128xf32>
    %9 = arith.truncf %8 : vector<2x128xf32> to vector<2x128xbf16>
    %c0_6 = arith.constant 0 : index
    %c0_7 = arith.constant 0 : index
    %10 = vector.load %arg4[%c0_6, %c0_7] : memref<128x128xbf16, #tpu.memory_space<vmem>>, vector<128x128xbf16>
    %cst_8 = arith.constant dense<0.000000e+00> : vector<2x128xf32>
    %11 = tpu.matmul %9, %10, %cst_8 {dimension_numbers = #tpu.dot_dimension_numbers<[1], [0], [0], [1], [0, 0, 1, 1], [], []>} : vector<2x128xbf16>, vector<128x128xbf16>, vector<2x128xf32> -> vector<2x128xf32>
    %c0_9 = arith.constant 0 : index
    %c0_10 = arith.constant 0 : index
    %12 = vector.load %arg5[%c0_9, %c0_10] : memref<1x128xf32, #tpu.memory_space<vmem>>, vector<1x128xf32>
    %13 = vector.broadcast %12 : vector<1x128xf32> to vector<2x128xf32>
    %14 = arith.addf %11, %13 : vector<2x128xf32>
    %cst_11 = arith.constant 0.000000e+00 : f32
    %15 = vector.broadcast %cst_11 : f32 to vector<2x128xf32>
    %16 = arith.maximumf %14, %15 : vector<2x128xf32>
    %17 = arith.truncf %16 : vector<2x128xf32> to vector<2x128xbf16>
    %c0_12 = arith.constant 0 : index
    %c0_13 = arith.constant 0 : index
    %18 = vector.load %arg6[%c0_12, %c0_13] : memref<128x128xbf16, #tpu.memory_space<vmem>>, vector<128x128xbf16>
    %cst_14 = arith.constant dense<0.000000e+00> : vector<2x128xf32>
    %19 = tpu.matmul %17, %18, %cst_14 {dimension_numbers = #tpu.dot_dimension_numbers<[1], [0], [0], [1], [0, 0, 1, 1], [], []>} : vector<2x128xbf16>, vector<128x128xbf16>, vector<2x128xf32> -> vector<2x128xf32>
    %c0_15 = arith.constant 0 : index
    %c0_16 = arith.constant 0 : index
    %20 = vector.load %arg7[%c0_15, %c0_16] : memref<1x128xf32, #tpu.memory_space<vmem>>, vector<1x128xf32>
    %21 = vector.broadcast %20 : vector<1x128xf32> to vector<2x128xf32>
    %22 = arith.addf %19, %21 : vector<2x128xf32>
    %cst_17 = arith.constant dense<0xFF800000> : vector<2xf32>
    %23 = vector.multi_reduction <maximumf>, %22, %cst_17 [1] : vector<2x128xf32> to vector<2xf32>
    %24 = vector.shape_cast %23 : vector<2xf32> to vector<2x1xf32>
    %25 = vector.broadcast %24 : vector<2x1xf32> to vector<2x128xf32>
    %26 = arith.subf %22, %25 : vector<2x128xf32>
    %27 = math.exp %26 : vector<2x128xf32>
    %cst_18 = arith.constant dense<0.000000e+00> : vector<2xf32>
    %28 = vector.multi_reduction <add>, %27, %cst_18 [1] : vector<2x128xf32> to vector<2xf32>
    %29 = vector.shape_cast %28 : vector<2xf32> to vector<2x1xf32>
    %30 = math.log %29 : vector<2x1xf32>
    %31 = vector.broadcast %30 : vector<2x1xf32> to vector<2x128xf32>
    %32 = arith.subf %26, %31 : vector<2x128xf32>
    %33 = arith.truncf %32 : vector<2x128xf32> to vector<2x128xbf16>
    %c0_19 = arith.constant 0 : index
    %c0_20 = arith.constant 0 : index
    %34 = vector.load %arg8[%c0_19, %c0_20] : memref<2x128xbf16, #tpu.memory_space<vmem>>, vector<2x128xbf16>
    tpu.vector_store %arg8[%c0_19, %c0_20], %33 {strides = array<i32>} : memref<2x128xbf16, #tpu.memory_space<vmem>>, vector<2x128xbf16>,
    return
  }
  func.func @transform_0(%arg0: i32) -> (i32, i32) {
    %c0_i32 = arith.constant 0 : i32
    %c0_i32_0 = arith.constant 0 : i32
    return %arg0, %c0_i32 : i32, i32
  }
  func.func @transform_1(%arg0: i32) -> (i32, i32) {
    %c0_i32 = arith.constant 0 : i32
    %c0_i32_0 = arith.constant 0 : i32
    %c0_i32_1 = arith.constant 0 : i32
    return %c0_i32, %c0_i32_0 : i32, i32
  }
  func.func @transform_2(%arg0: i32) -> (i32, i32) {
    %c0_i32 = arith.constant 0 : i32
    %c0_i32_0 = arith.constant 0 : i32
    %c0_i32_1 = arith.constant 0 : i32
    return %c0_i32, %c0_i32_0 : i32, i32
  }
  func.func @transform_3(%arg0: i32) -> (i32, i32) {
    %c0_i32 = arith.constant 0 : i32
    %c0_i32_0 = arith.constant 0 : i32
    %c0_i32_1 = arith.constant 0 : i32
    return %c0_i32, %c0_i32_0 : i32, i32
  }
  func.func @transform_4(%arg0: i32) -> (i32, i32) {
    %c0_i32 = arith.constant 0 : i32
    %c0_i32_0 = arith.constant 0 : i32
    %c0_i32_1 = arith.constant 0 : i32
    return %c0_i32, %c0_i32_0 : i32, i32
  }
  func.func @transform_5(%arg0: i32) -> (i32, i32) {
    %c0_i32 = arith.constant 0 : i32
    %c0_i32_0 = arith.constant 0 : i32
    %c0_i32_1 = arith.constant 0 : i32
    return %c0_i32, %c0_i32_0 : i32, i32
  }
  func.func @transform_6(%arg0: i32) -> (i32, i32) {
    %c0_i32 = arith.constant 0 : i32
    %c0_i32_0 = arith.constant 0 : i32
    %c0_i32_1 = arith.constant 0 : i32
    return %c0_i32, %c0_i32_0 : i32, i32
  }
  func.func @transform_7(%arg0: i32) -> (i32, i32) {
    %c0_i32 = arith.constant 0 : i32
    %c0_i32_0 = arith.constant 0 : i32
    return %arg0, %c0_i32 : i32, i32
  }
}

</mosaic_0001>

<bundles_post_ra>
// kernel: tpu_custom_call.1
= control target key start
LH: loop header
LB: loop body
LE: loop exit
PB: predicated region body
PF: predicated region fallthrough
CT: control target
= control target key end

     0   :  { %12 = vsyncpa [#allocation3], 0  ;;  %s1505_s0 = inlined_call_operand.hbm [shape: f32[2,784], index: 0, kind: input, shape index: {}]   ;;  %s1506_s1 = inlined_call_operand.hbm [shape: bf16[784,128], index: 1, kind: input, shape index: {}]   ;;  %s1507_s2 = inlined_call_operand.vmem [shape: f32[1,128], index: 2, kind: input, shape index: {}]   ;;  %s1508_s3 = inlined_call_operand.hbm [shape: bf16[128,128], index: 3, kind: input, shape index: {}]   ;;  %s1509_s4 = inlined_call_operand.vmem [shape: f32[1,128], index: 4, kind: input, shape index: {}]   ;;  %s1510_s5 = inlined_call_operand.hbm [shape: bf16[128,128], index: 5, kind: input, shape index: {}]   ;;  %s1511_s6 = inlined_call_operand.vmem [shape: f32[1,128], index: 6, kind: input, shape index: {}]   ;;  %s1512_s7 = inlined_call_operand.hbm [shape: bf16[2,128], index: 7, kind: output, shape index: {}]  }
   0x1   :  { %13 = vsyncpa [#allocation6], 0 }
   0x2   :  { %14 = vsyncpa [#allocation9], 0 }
   0x3   :  { %15 = vsyncpa [#allocation4], 0  ;;  %s1353_s24 = smov [#allocation5]   ;;  %s1235_s28 = scalar_lea.hbm %s1506_s1, 6272 }
   0x4   :  { %s31_s25 = sshll.u32 %s1353_s24, 4  ;;  %p1236_p0 = scmp.ne.s32.totalorder %s1506_s1, %s1235_s28  ;;  %s32_s25 = int_to_ptr.vmem [resolvable:$true] %s31_s25 }
   0x5   :  { %p1239_p1 = scmp.lt.u32.totalorder %s1235_s28, %s1506_s1 }
   0x7   :  { %p1241_p2 = pnand %p1239_p1, %p1236_p0 }
   0x9   :  { %1244 = shalt.err (!%p1241_p2)
}
   0xa   :  { %s1245_s10 = scalar_lea.vmem %s32_s25, 6272  ;;  %p1250_p4 = scmp.lt.s32.totalorder %s32_s25, %s32_s25 }
   0xb   :  { %p1246_p3 = scmp.ne.s32.totalorder %s32_s25, %s1245_s10  ;;  %p1251_p5 = scmp.lt.s32.totalorder %s1245_s10, %s1245_s10 }
   0xd   :  { %p1252_p6 = por %p1251_p5, %p1250_p4 }
   0xf   :  { %p1253_p7 = pnand %p1252_p6, %p1246_p3 }
  0x11   :  { %1256 = shalt.err (!%p1253_p7)
}
  0x12   :  { %s1354_s11 = smov 64   ;;  %s1355_s12 = smov 4  }
  0x13   :  { %37 = dma.hbm_to_vmem [thread:$0]  %s1506_s1, 6272, %s32_s25, [#allocation6], %s1354_s11, %s1354_s11, %s1355_s12  }
  0x14   :  { %s1356_s15 = smov [#allocation2]   ;;  %s1357_s17 = smov [#allocation7]  }
  0x15   :  { %s22_s16 = sshll.u32 %s1356_s15, 4  ;;  %s45_s18 = sshll.u32 %s1357_s17, 4  ;;  %s23_s16 = int_to_ptr.vmem [resolvable:$true] %s22_s16  ;;  %s46_s18 = int_to_ptr.vmem [resolvable:$true] %s45_s18 }
  0x16   :  { %s1257_s21 = scalar_lea.hbm %s1505_s0, 224 }
  0x17   :  { %p1258_p8 = scmp.ne.s32.totalorder %s1505_s0, %s1257_s21  ;;  %p1261_p9 = scmp.lt.u32.totalorder %s1257_s21, %s1505_s0 }
  0x19   :  { %p1263_p10 = pnand %p1261_p9, %p1258_p8 }
  0x1b   :  { %1266 = shalt.err (!%p1263_p10)
}
  0x1c   :  { %s1267_s1 = scalar_lea.vmem %s23_s16, 224  ;;  %p1272_p12 = scmp.lt.s32.totalorder %s23_s16, %s23_s16 }
  0x1d   :  { %p1268_p11 = scmp.ne.s32.totalorder %s23_s16, %s1267_s1  ;;  %p1273_p13 = scmp.lt.s32.totalorder %s1267_s1, %s1267_s1 }
  0x1f   :  { %p1274_p0 = por %p1273_p13, %p1272_p12 }
  0x21   :  { %p1275_p1 = pnand %p1274_p0, %p1268_p11 }
  0x23   :  { %1278 = shalt.err (!%p1275_p1)
}
  0x24   :  { %25 = dma.hbm_to_vmem [thread:$0]  %s1505_s0, 224, %s23_s16, [#allocation3]  }
  0x25   :  { %s1279_s30 = scalar_lea.hbm %s1508_s3, 1024 }
  0x26   :  { %p1280_p2 = scmp.ne.s32.totalorder %s1508_s3, %s1279_s30  ;;  %p1283_p3 = scmp.lt.u32.totalorder %s1279_s30, %s1508_s3 }
  0x28   :  { %p1285_p4 = pnand %p1283_p3, %p1280_p2 }
  0x2a   :  { %1288 = shalt.err (!%p1285_p4)
}
  0x2b   :  { %s1289_s14 = scalar_lea.vmem %s46_s18, 1024  ;;  %p1294_p6 = scmp.lt.s32.totalorder %s46_s18, %s46_s18 }
  0x2c   :  { %p1290_p5 = scmp.ne.s32.totalorder %s46_s18, %s1289_s14  ;;  %p1295_p7 = scmp.lt.s32.totalorder %s1289_s14, %s1289_s14 }
  0x2e   :  { %p1296_p8 = por %p1295_p7, %p1294_p6 }
  0x30   :  { %p1297_p9 = pnand %p1296_p8, %p1290_p5 }
  0x32   :  { %1300 = shalt.err (!%p1297_p9)
}
  0x33   :  { %51 = dma.hbm_to_vmem [thread:$0]  %s1508_s3, 1024, %s46_s18, [#allocation6], %s1354_s11, %s1354_s11, %s1355_s12  }
  0x34   :  { %s1358_s16 = smov [#allocation8]   ;;  %s1301_s21 = scalar_lea.hbm %s1510_s5, 1024 }
  0x35   :  { %s59_s17 = sshll.u32 %s1358_s16, 4  ;;  %p1302_p10 = scmp.ne.s32.totalorder %s1510_s5, %s1301_s21  ;;  %s60_s17 = int_to_ptr.vmem [resolvable:$true] %s59_s17 }
  0x36   :  { %p1305_p11 = scmp.lt.u32.totalorder %s1301_s21, %s1510_s5 }
  0x38   :  { %p1307_p12 = pnand %p1305_p11, %p1302_p10 }
  0x3a   :  { %1310 = shalt.err (!%p1307_p12)
}
  0x3b   :  { %s1311_s1 = scalar_lea.vmem %s60_s17, 1024  ;;  %p1316_p0 = scmp.lt.s32.totalorder %s60_s17, %s60_s17 }
  0x3c   :  { %p1312_p13 = scmp.ne.s32.totalorder %s60_s17, %s1311_s1  ;;  %p1317_p1 = scmp.lt.s32.totalorder %s1311_s1, %s1311_s1 }
  0x3e   :  { %p1318_p2 = por %p1317_p1, %p1316_p0 }
  0x40   :  { %p1319_p3 = pnand %p1318_p2, %p1312_p13 }
  0x42   :  { %1322 = shalt.err (!%p1319_p3)
}
  0x43   :  { %65 = dma.hbm_to_vmem [thread:$0]  %s1510_s5, 1024, %s60_s17, [#allocation9], %s1354_s11, %s1354_s11, %s1355_s12  }
  0x44   :  { %1345 = dma.done.wait [#allocation3], 224  }
  0x45   :  { %1346 = vsyncadd [#allocation3], 4294967072 }
  0x46   :  { %1347 = dma.done.wait [#allocation6], 7296  }
  0x47   :  { %1348 = vsyncadd [#allocation6], 4294960000 }
  0x48   :  { %1349 = dma.done.wait [#allocation9], 1024  }
  0x49   :  { %1350 = vsyncadd [#allocation9], 4294966272  ;;  %v1164_v0 = vld [vmem:[#allocation5 + $0x40] sm:$0xff]   ;;  %v1168_v4 = vld [vmem:[#allocation5 + $0x48] sm:$0xff]   ;;  %v1359_v21 = vmov 1983009808   ;;  %v89_v23 = vlaneseq }
  0x4a   :  { %v1165_v1 = vld [vmem:[#allocation5] sm:$0xff]   ;;  %1022 = vmatprep.subr.bf16.mxu0 %v1164_v0  ;;  %v1169_v5 = vld [vmem:[#allocation5 + $0x8] sm:$0xff]   ;;  %v1172_v8 = vld [vmem:[#allocation5 + $0x50] sm:$0xff]   ;;  %v87_v22 = vunpack.c.l.s4 %v1359_v21  ;;  %v1360_v45 = vmov 0.0   ;;  %vm1361_vm0 = vmmov 0   ;;  %vm531_vm1 = vcmask 130048  }
  0x4b   :  { %v1166_v2 = vld [vmem:[#allocation5 + $0xc0] sm:$0xff]   ;;  %1023 = vmatpush3.bf16.msra.mxu0 %v1165_v1  ;;  %v1170_v6 = vld [vmem:[#allocation5 + $0xc8] sm:$0xff]   ;;  %v1173_v9 = vld [vmem:[#allocation5 + $0x10] sm:$0xff]   ;;  %v90_v29 = vshrl.u32 %v89_v23, 7  ;;  %vm921_vm2 = vcmask 1041408  }
  0x4c   :  { %v1167_v3 = vld [vmem:[#allocation5 + $0x80] sm:$0xff]   ;;  %1044 = vmatprep.subr.bf16.mxu1 %v1166_v2  ;;  %1024 = vmatprep.subr.bf16.mxu0 %v1168_v4  ;;  %v1171_v7 = vld [vmem:[#allocation5 + $0x88] sm:$0xff]   ;;  %v1174_v10 = vld [vmem:[#allocation5 + $0xd0] sm:$0xff]   ;;  %v88_v28 = vunpack.c.0.s8 %v87_v22 }
  0x4d   :  { %1045 = vmatpush3.bf16.msra.mxu1 %v1167_v3  ;;  %v1175_v11 = vld [vmem:[#allocation5 + $0x90] sm:$0xff]   ;;  %v1176_v12 = vld [vmem:[#allocation5 + $0x58] sm:$0xff]   ;;  %v1180_v16 = vld [vmem:[#allocation5 + $0x60] sm:$0xff]  }
  0x4e   :  { %1046 = vmatprep.subr.bf16.mxu1 %v1170_v6  ;;  %v1177_v13 = vld [vmem:[#allocation5 + $0x18] sm:$0xff]   ;;  %v1181_v17 = vld [vmem:[#allocation5 + $0x20] sm:$0xff]   ;;  %v1184_v20 = vld [vmem:[#allocation5 + $0x68] sm:$0xff]   ;;  %v91_v34 = vsub.s32 %v88_v28, %v90_v29 }
  0x4f   :  { %1025 = vmatpush3.bf16.msra.mxu0 %v1169_v5  ;;  %v1178_v14 = vld [vmem:[#allocation5 + $0xd8] sm:$0xff]   ;;  %v1182_v18 = vld [vmem:[#allocation5 + $0xe0] sm:$0xff]   ;;  %v1185_v24 = vld [vmem:[#allocation5 + $0x28] sm:$0xff]  }
  0x50   :  { %1026 = vmatprep.subr.bf16.mxu0 %v1172_v8  ;;  %v1179_v15 = vld [vmem:[#allocation5 + $0x98] sm:$0xff]   ;;  %v1183_v19 = vld [vmem:[#allocation5 + $0xa0] sm:$0xff]   ;;  %v1186_v25 = vld [vmem:[#allocation5 + $0xe8] sm:$0xff]  }
  0x51   :  { %1047 = vmatpush3.bf16.msra.mxu1 %v1171_v7  ;;  %v1187_v26 = vld [vmem:[#allocation5 + $0xa8] sm:$0xff]   ;;  %v1188_v27 = vld [vmem:[#allocation5 + $0x70] sm:$0xff]   ;;  %v1192_v33 = vld [vmem:[#allocation5 + $0x78] sm:$0xff]  }
  0x52   :  { %1048 = vmatprep.subr.bf16.mxu1 %v1174_v10  ;;  %v1189_v30 = vld [vmem:[#allocation5 + $0x30] sm:$0xff]   ;;  %v1193_v35 = vld [vmem:[#allocation5 + $0x38] sm:$0xff]   ;;  %v1196_v41 = vld [vmem:[#allocation5 + $0x140] sm:$0xff]  }
  0x53   :  { %1027 = vmatpush3.bf16.msra.mxu0 %v1173_v9  ;;  %v1190_v31 = vld [vmem:[#allocation5 + $0xf0] sm:$0xff]   ;;  %v1194_v36 = vld [vmem:[#allocation5 + $0xf8] sm:$0xff]   ;;  %v1198_v48 = vld [vmem:[#allocation5 + $0x100] sm:$0xff]  }
  0x54   :  { %1028 = vmatprep.subr.bf16.mxu0 %v1176_v12  ;;  %v1191_v32 = vld [vmem:[#allocation5 + $0xb0] sm:$0xff]   ;;  %v1195_v39 = vld [vmem:[#allocation5 + $0xb8] sm:$0xff]   ;;  %v1199_v50 = vld [vmem:[#allocation5 + $0x148] sm:$0xff]  }
  0x55   :  { %1049 = vmatpush3.bf16.msra.mxu1 %v1175_v11  ;;  %v81_v37 = vld [vmem:[#allocation2] sm:$0xff]  ;;  %v1200_v52 = vld [vmem:[#allocation5 + $0x108] sm:$0xff]   ;;  %v1205_v57 = vld [vmem:[#allocation5 + $0x160] sm:$0xff]  }
  0x56   :  { %1050 = vmatprep.subr.bf16.mxu1 %v1178_v14  ;;  %v92_v38 = vrot.slane %v81_v37, %v91_v34  ;;  %v85_v40 = vcombine.high %v81_v37, %v81_v37  ;;  %v1201_v53 = vld [vmem:[#allocation5 + $0x150] sm:$0xff]   ;;  %v1203_v55 = vld [vmem:[#allocation5 + $0x158] sm:$0xff]   ;;  %v1213_v58 = vld [vmem:[#allocation5 + $0x180] sm:$0xff]  }
  0x57   :  { %1029 = vmatpush3.bf16.msra.mxu0 %v1177_v13  ;;  %v1202_v54 = vld [vmem:[#allocation5 + $0x110] sm:$0xff]   ;;  %v1204_v56 = vld [vmem:[#allocation5 + $0x118] sm:$0xff]   ;;  %v1206_v60 = vld [vmem:[#allocation5 + $0x120] sm:$0xff]  }
  0x58   :  { %1030 = vmatprep.subr.bf16.mxu0 %v1180_v16  ;;  %v100_v42 = vcombine.high %v92_v38, %v92_v38  ;;  %v99_v43 = vrot.slane %v85_v40, %v91_v34  ;;  %v125_v44 = vpack.c.bf16 %v92_v38, %v92_v38  ;;  %v82_v59 = vld [vmem:[#allocation2 + $0x8] sm:$0x3f]  ;;  %v1207_v63 = vld [vmem:[#allocation5 + $0x168] sm:$0xff]   ;;  %v1209_v5 = vld [vmem:[#allocation5 + $0x170] sm:$0xff]  }
  0x59   :  { %1051 = vmatpush3.bf16.msra.mxu1 %v1179_v15  ;;  %v102_v61 = vcombine.high %v82_v59, %v82_v59  ;;  %v109_v62 = vrot.slane %v82_v59, %v91_v34  ;;  %v1208_v2 = vld [vmem:[#allocation5 + $0x128] sm:$0xff]   ;;  %v1210_v6 = vld [vmem:[#allocation5 + $0x130] sm:$0xff]   ;;  %v1211_v7 = vld [vmem:[#allocation5 + $0x178] sm:$0xff]  }
  0x5a   :  { %1052 = vmatprep.subr.bf16.mxu1 %v1182_v18  ;;  %v126_v46 = vpack.c.bf16 %v100_v42, %v100_v42  ;;  %v101_v47 = vcombine.high %v99_v43, %v99_v43  ;;  %v127_v49 = vpack.c.bf16 %v99_v43, %v99_v43  ;;  %v1212_v8 = vld [vmem:[#allocation5 + $0x138] sm:$0xff]   ;;  %v1215_v10 = vld [vmem:[#allocation7] sm:$0xff]   ;;  %v1216_v11 = vld [vmem:[#allocation7 + $0x8] sm:$0xff]  }
  0x5b   :  { %1031 = vmatpush3.bf16.msra.mxu0 %v1181_v17  ;;  %v116_v0 = vrot.slane %v102_v61, %v91_v34  ;;  %v117_v1 = vcombine.high %v109_v62, %v109_v62  ;;  %v129_v9 = vpack.c.bf16 %v109_v62, %v109_v62  ;;  %v1217_v12 = vld [vmem:[#allocation7 + $0x10] sm:$0xff]   ;;  %v1218_v13 = vld [vmem:[#allocation7 + $0x18] sm:$0xff]   ;;  %v1219_v14 = vld [vmem:[#allocation7 + $0x20] sm:$0xff]  }
  0x5c   :  { %1032 = vmatprep.subr.bf16.mxu0 %v1184_v20  ;;  %567 = vmatprep.mubr.bf16.mxu0 %v126_v46  ;;  %v128_v51 = vpack.c.bf16 %v101_v47, %v101_v47  ;;  %v1220_v15 = vld [vmem:[#allocation7 + $0x28] sm:$0xff]   ;;  %v1221_v16 = vld [vmem:[#allocation7 + $0x30] sm:$0xff]   ;;  %v1222_v17 = vld [vmem:[#allocation7 + $0x38] sm:$0xff]  }
  0x5d   :  { %1053 = vmatpush3.bf16.msra.mxu1 %v1183_v19  ;;  %v130_v3 = vpack.c.bf16 %v117_v1, %v117_v1  ;;  %v131_v4 = vpack.c.bf16 %v116_v0, %v116_v0  ;;  %v1223_v18 = vld [vmem:[#allocation8] sm:$0xff]   ;;  %v1224_v19 = vld [vmem:[#allocation8 + $0x8] sm:$0xff]   ;;  %v1225_v20 = vld [vmem:[#allocation8 + $0x10] sm:$0xff]  }
  0x5e   :  { %1054 = vmatprep.subr.bf16.mxu1 %v1186_v25  ;;  %607 = vmatprep.mubr.bf16.mxu1 %v128_v51  ;;  %v1226_v21 = vld [vmem:[#allocation8 + $0x18] sm:$0xff]   ;;  %v1227_v22 = vld [vmem:[#allocation8 + $0x20] sm:$0xff]   ;;  %v1228_v23 = vld [vmem:[#allocation8 + $0x28] sm:$0xff]  }
  0x5f   :  { %1033 = vmatpush3.bf16.msra.mxu0 %v1185_v24  ;;  %v953_v25 = vld [vmem:[%s1507_s2] ss:$0 sm:$0xff]  ;;  %v1229_v51 = vld [vmem:[#allocation8 + $0x30] sm:$0xff]  }
  0x60   :  { %1034 = vmatprep.subr.bf16.mxu0 %v1188_v27  ;;  %v1013_v61 = vld [vmem:[%s1511_s6] ss:$0 sm:$0xff] }
  0x61   :  { %1055 = vmatpush3.bf16.msra.mxu1 %v1187_v26 }
  0x62   :  { %1056 = vmatprep.subr.bf16.mxu1 %v1190_v31 }
  0x63   :  { %1035 = vmatpush3.bf16.msra.mxu0 %v1189_v30 }
  0x64   :  { %1036 = vmatprep.subr.bf16.mxu0 %v1192_v33 }
  0x65   :  { %1057 = vmatpush3.bf16.msra.mxu1 %v1191_v32 }
  0x66   :  { %1058 = vmatprep.subr.bf16.mxu1 %v1194_v36 }
  0x67   :  { %1037 = vmatpush3.bf16.msra.mxu0 %v1193_v35 }
  0x68   :  { %1066 = vmatprep.subr.bf16.mxu0 %v1196_v41 }
  0x69   :  { %1059 = vmatpush3.bf16.msra.mxu1 %v1195_v39 }
  0x6a   :  { %1108 = vmatprep.subr.bf16.mxu1 %v1360_v45  ;;  %568 = vmatmul.mubr.bf16.vlgmr.msra.gmra.mrb[0].mxu0 %v125_v44 }
  0x6b   :  { %1067 = vmatpush3.bf16.msra.mxu0 %v1198_v48  ;;  %647 = vmatprep.mubr.bf16.mxu0 %v130_v3 }
  0x6c   :  { %608 = vmatmul.mubr.bf16.vlgmr.msra.gmra.mrb[0].mxu1 %v127_v49  ;;  %1068 = vmatprep.subr.bf16.mxu0 %v1199_v50 }
  0x6d   :  { %1110 = vmatprep.mubr.msk.bf16.mxu1 %vm1361_vm0, %v1360_v45  ;;  %1109 = vmatpush3.bf16.msra.mxu1 %v1213_v58 }
  0x6e   :  { %1114 = vmatprep.subr.bf16.mxu1 %v1360_v45 }
  0x6f   :  { %1069 = vmatpush3.bf16.msra.mxu0 %v1200_v52  ;;  %v1230_v52 = vld [vmem:[#allocation8 + $0x38] sm:$0xff]  }
  0x70   :  { %1070 = vmatprep.subr.bf16.mxu0 %v1201_v53  ;;  %v1004_v53 = vld [vmem:[%s1509_s4] ss:$0 sm:$0xff]  ;;  %s1362_s4 = smov [#allocation10]  }
  0x71   :  { %s942_s6 = sshll.u32 %s1362_s4, 4  ;;  %s943_s6 = int_to_ptr.vmem [resolvable:$true] %s942_s6 }
  0x72   :  { %s1323_s28 = scalar_lea.vmem %s943_s6, 16  ;;  %s1327_s29 = scalar_lea.vmem %s943_s6, 32 }
  0x73   :  { %1071 = vmatpush3.bf16.msra.mxu0 %v1202_v54  ;;  %p1324_p4 = scmp.ne.s32.totalorder %s943_s6, %s1323_s28  ;;  %p1328_p5 = scmp.lt.s32.totalorder %s943_s6, %s943_s6 }
  0x74   :  { %1072 = vmatprep.subr.bf16.mxu0 %v1203_v55  ;;  %1111 = vmatmul.mubr.msk.bf16.vlgmr.msra.gmra.mrb[4].mxu1 %vm531_vm1, %v131_v4  ;;  %p1329_p6 = scmp.lt.s32.totalorder %s1327_s29, %s1323_s28 }
  0x75   :  { %1130 = vmatprep.mubr.msk.bf16.mxu1 %vm1361_vm0, %v1360_v45  ;;  %1115 = vmatpush3.bf16.msra.mxu1 %v1215_v10 }
  0x76   :  { %1116 = vmatprep.subr.bf16.mxu1 %v1360_v45  ;;  %p1330_p7 = por %p1329_p6, %p1328_p5 }
  0x77   :  { %1073 = vmatpush3.bf16.msra.mxu0 %v1204_v56 }
  0x78   :  { %1074 = vmatprep.subr.bf16.mxu0 %v1205_v57  ;;  %p1331_p8 = pnand %p1330_p7, %p1324_p4 }
  0x79   :  { %1117 = vmatpush3.bf16.msra.mxu1 %v1216_v11 }
  0x7a   :  { %1118 = vmatprep.subr.bf16.mxu1 %v1360_v45 }
  0x7b   :  { %1075 = vmatpush3.bf16.msra.mxu0 %v1206_v60 }
  0x7c   :  { %1076 = vmatprep.subr.bf16.mxu0 %v1207_v63 }
  0x7d   :  { %1119 = vmatpush3.bf16.msra.mxu1 %v1217_v12 }
  0x7e   :  { %1120 = vmatprep.subr.bf16.mxu1 %v1360_v45 }
  0x7f   :  { %1077 = vmatpush3.bf16.msra.mxu0 %v1208_v2 }
  0x80   :  { %1078 = vmatprep.subr.bf16.mxu0 %v1209_v5 }
  0x81   :  { %1121 = vmatpush3.bf16.msra.mxu1 %v1218_v13 }
  0x82   :  { %1122 = vmatprep.subr.bf16.mxu1 %v1360_v45 }
  0x83   :  { %1079 = vmatpush3.bf16.msra.mxu0 %v1210_v6 }
  0x84   :  { %1080 = vmatprep.subr.bf16.mxu0 %v1211_v7 }
  0x85   :  { %1123 = vmatpush3.bf16.msra.mxu1 %v1219_v14 }
  0x86   :  { %1124 = vmatprep.subr.bf16.mxu1 %v1360_v45 }
  0x87   :  { %1081 = vmatpush3.bf16.msra.mxu0 %v1212_v8 }
  0x88   :  { %1134 = vmatprep.subr.bf16.mxu0 %v1360_v45 }
  0x89   :  { %1125 = vmatpush3.bf16.msra.mxu1 %v1220_v15 }
  0x8a   :  { %648 = vmatmul.mubr.bf16.vlgmr.msra.gmra.mrb[4].mxu0 %v129_v9  ;;  %1126 = vmatprep.subr.bf16.mxu1 %v1360_v45 }
  0x8b   :  { %1150 = vmatprep.mubr.msk.bf16.mxu0 %vm1361_vm0, %v1360_v45  ;;  %1135 = vmatpush3.bf16.msra.mxu0 %v1223_v18 }
  0x8c   :  { %1136 = vmatprep.subr.bf16.mxu0 %v1360_v45 }
  0x8d   :  { %1127 = vmatpush3.bf16.msra.mxu1 %v1221_v16 }
  0x8e   :  { %1128 = vmatprep.subr.bf16.mxu1 %v1360_v45 }
  0x8f   :  { %1137 = vmatpush3.bf16.msra.mxu0 %v1224_v19 }
  0x90   :  { %1138 = vmatprep.subr.bf16.mxu0 %v1360_v45 }
  0x91   :  { %1129 = vmatpush3.bf16.msra.mxu1 %v1222_v17 }
  0x93   :  { %1139 = vmatpush3.bf16.msra.mxu0 %v1225_v20 }
  0x94   :  { %1140 = vmatprep.subr.bf16.mxu0 %v1360_v45 }
  0x97   :  { %1141 = vmatpush3.bf16.msra.mxu0 %v1226_v21 }
  0x98   :  { %1142 = vmatprep.subr.bf16.mxu0 %v1360_v45 }
  0x9b   :  { %1143 = vmatpush3.bf16.msra.mxu0 %v1227_v22 }
  0x9c   :  { %1144 = vmatprep.subr.bf16.mxu0 %v1360_v45 }
  0x9f   :  { %1145 = vmatpush3.bf16.msra.mxu0 %v1228_v23 }
  0xa0   :  { %1146 = vmatprep.subr.bf16.mxu0 %v1360_v45 }
  0xa3   :  { %1147 = vmatpush3.bf16.msra.mxu0 %v1229_v51 }
  0xa4   :  { %1148 = vmatprep.subr.bf16.mxu0 %v1360_v45 }
  0xa7   :  { %1149 = vmatpush3.bf16.msra.mxu0 %v1230_v52 }
 0x13d   :  { %v1038_v24 = vpop.f32.mrb[0].mxu0 }
 0x13e   :  { %v1039_v26 = vpop.f32.mrb[1].mxu0 }
 0x13f   :  { %v1040_v27 = vadd.f32 %v1039_v26, %v1038_v24  ;;  %v1041_v28 = vpop.f32.mrb[2].mxu0  ;;  %v1060_v29 = vpop.f32.mrb[0].mxu1 }
 0x140   :  { %v1042_v30 = vpop.f32.mrb[3].mxu0  ;;  %v1061_v31 = vpop.f32.mrb[1].mxu1 }
 0x141   :  { %v570_v32 = vadd.f32 %v1040_v27, %v953_v25  ;;  %v1062_v33 = vadd.f32 %v1061_v31, %v1060_v29  ;;  %v1063_v34 = vpop.f32.mrb[2].mxu1 }
 0x142   :  { %v1064_v35 = vpop.f32.mrb[3].mxu1 }
 0x143   :  { %v610_v36 = vadd.f32 %v1062_v33, %v570_v32 }
 0x147   :  { %v689_v37 = vpop.f32.mrb[4].mxu1 }
 0x148   :  { %v1112_v38 = vpop.f32.mrb[5].mxu1 }
 0x149   :  { %v692_v39 = vpop.f32.mrb[6].mxu1 }
 0x14a   :  { %v1113_v40 = vpop.f32.mrb[7].mxu1 }
 0x15d   :  { %v1082_v41 = vpop.f32.mrb[4].mxu0 }
 0x15e   :  { %v1083_v42 = vpop.f32.mrb[5].mxu0 }
 0x15f   :  { %v1084_v43 = vadd.f32 %v1083_v42, %v1082_v41  ;;  %v1085_v44 = vpop.f32.mrb[6].mxu0 }
 0x160   :  { %v1086_v46 = vpop.f32.mrb[7].mxu0 }
 0x161   :  { %v650_v47 = vadd.f32 %v1084_v43, %v610_v36 }
 0x163   :  { %v690_v48 = vadd.f32 %v689_v37, %v650_v47 }
 0x165   :  { %v695_v49 = vmax.f32 %v690_v48, 0.0 }
 0x167   :  { %v696_v50 = vpack.c.bf16 %v695_v49, %v695_v49 }
 0x169   :  { %1131 = vmatmul.mubr.bf16.vlgmr.msra.gmra.mrb[8].mxu1 %v696_v50 }
 0x23c   :  { %v802_v54 = vpop.f32.mrb[8].mxu1 }
 0x23d   :  { %v803_v55 = vadd.f32 %v1004_v53, %v802_v54  ;;  %v1132_v56 = vpop.f32.mrb[9].mxu1 }
 0x23e   :  { %v805_v57 = vpop.f32.mrb[10].mxu1 }
 0x23f   :  { %v808_v58 = vmax.f32 %v803_v55, 0.0  ;;  %v1133_v59 = vpop.f32.mrb[11].mxu1 }
 0x241   :  { %v809_v60 = vpack.c.bf16 %v808_v58, %v808_v58 }
 0x243   :  { %1151 = vmatmul.mubr.bf16.vlgmr.msra.gmra.mrb[8].mxu0 %v809_v60 }
 0x316   :  { %v915_v62 = vpop.f32.mrb[8].mxu0 }
 0x317   :  { %v916_v45 = vadd.f32 %v1013_v61, %v915_v62  ;;  %v1152_v63 = vpop.f32.mrb[9].mxu0 }
 0x318   :  { %v918_v0 = vpop.f32.mrb[10].mxu0 }
 0x319   :  { %v1153_v1 = vpop.f32.mrb[11].mxu0  ;;  %v922_v2 = vsel %vm921_vm2, %v916_v45, -inf }
 0x31a   :  { %923 = vmax.xlane.f32.xlu0 %v922_v2 }
 0x3a7   :  { %v924_v3 = vpop.xlane.xlu0 %923 }
 0x3a8   :  { %v925_v4 = vsub.f32 %v916_v45, %v924_v3 }
 0x3aa   :  { %v926_v5 = vmul.f32 1.442695, %v925_v4 }
 0x3ac   :  { %1231 = vpow2.f32 %v926_v5 }
 0x3b6   :  { %v1232_v6 = vpop.eup %1231 }
 0x3b7   :  { %v928_v7 = vsel %vm921_vm2, %v1232_v6, 0.0 }
 0x3b8   :  { %929 = vadd.xlane.f32.xlu0 %v928_v7 }
 0x445   :  { %v930_v8 = vpop.xlane.xlu0 %929 }
 0x446   :  { %1233 = vlog2.f32 %v930_v8 }
 0x450   :  { %v1234_v9 = vpop.eup %1233 }
 0x451   :  { %v932_v10 = vmul.f32 0.6931472, %v1234_v9 }
 0x453   :  { %v933_v11 = vsub.f32 %v925_v4, %v932_v10 }
 0x455   :  { %v934_v12 = vpack.c.bf16 %v933_v11, %v933_v11 }
 0x457   :  { %935 = vst [vmem:[#allocation10] sm:$0x1] %v934_v12 }
 0x458   :  { %1334 = shalt.err (!%p1331_p8)
}
 0x459   :  { %s1335_s9 = scalar_lea.hbm %s1512_s7, 16 }
 0x45a   :  { %p1336_p9 = scmp.ne.s32.totalorder %s1512_s7, %s1335_s9  ;;  %p1339_p10 = scmp.lt.u32.totalorder %s1335_s9, %s1512_s7 }
 0x45c   :  { %p1341_p11 = pnand %p1339_p10, %p1336_p9 }
 0x45e   :  { %1344 = shalt.err (!%p1341_p11)
}
 0x45f   :  { %945 = dma.vmem_to_hbm [thread:$0]  %s943_s6, 16, %s1512_s7, [#allocation4]  }
 0x460   :  { %1351 = dma.done.wait [#allocation4], 16  }
 0x461   :  { %1352 = vsyncadd [#allocation4], 4294967280 }
 0x462   :  { %949 = vsyncpa [#allocation3], 1 }
 0x463   :  { %950 = vsyncpa [#allocation6], 1 }
 0x464   :  { %951 = vsyncpa [#allocation9], 1 }
 0x465   :  { %952 = vsyncpa [#allocation4], 1 }

</bundles_post_ra>
